<compile_context>
chip_gen: v5e
topology: v5e:2x2
jax: 0.10.0
libtpu: 0.0.40
codegen_flags: <defaults>
</compile_context>

<pallas_src>
import jax
import jax.numpy as jnp
from jax.experimental import pallas as pl
from jax.experimental.pallas import tpu as pltpu

LANES = 128


def het_spindly_head_kernel(w1_ref, w2_ref, x_ref, o_ref):
    # w1_ref / w2_ref: SMEM scalars (shape (1,)); x_ref / o_ref: (rows, 128) VMEM tiles.
    w1 = w1_ref[0]
    w2 = w2_ref[0]
    x = x_ref[...]

    # Interleaved weight vreg: w1 on even lanes (feature 0), w2 on odd lanes (feature 1).
    lane = jax.lax.broadcasted_iota(jnp.int32, x.shape, dimension=1)
    odd = (lane & 1) == 1
    w_vec = jnp.where(odd, w2, w1)

    y = x * w_vec                         # VPU elementwise "1x1 Linear"
    # exp only on odd lanes; even-lane exp results are discarded by the select
    # (y is always finite, so no NaN can propagate through the where).
    o_ref[...] = jnp.where(odd, jnp.exp(y), y)


def _main_slab_call(slab, w1, w2, rows, dtype, *,
                    max_block_rows, min_block_rows, single_block_rows):
    """Run the kernel over a lane-dense (rows, 128) slab."""
    if rows <= single_block_rows:
        # Tiny input: one block, no grid (avoid per-step overhead).
        return pl.pallas_call(
            het_spindly_head_kernel,
            out_shape=jax.ShapeDtypeStruct((rows, LANES), dtype),
            in_specs=[
                pl.BlockSpec(memory_space=pltpu.SMEM),        # w1 scalar
                pl.BlockSpec(memory_space=pltpu.SMEM),        # w2 scalar
                pl.BlockSpec((rows, LANES), lambda: (0, 0)),  # full-array block
            ],
            out_specs=pl.BlockSpec((rows, LANES), lambda: (0, 0)),
        )(w1, w2, slab)

    # Gridded path: pick a block size that (a) is large enough to amortize the
    # ~0.35 us per-step cost, (b) keeps >= ~4 grid steps so v7x's two TensorCores
    # both get work, (c) is a multiple of 8 sublanes.
    target = ((pl.cdiv(rows, 4) + 7) // 8) * 8
    block_rows = max(min(max_block_rows, target), min_block_rows)
    num_blocks = pl.cdiv(rows, block_rows)   # last block may be ragged; Pallas masks it

    return pl.pallas_call(
        het_spindly_head_kernel,
        out_shape=jax.ShapeDtypeStruct((rows, LANES), dtype),
        grid=(num_blocks,),
        in_specs=[
            pl.BlockSpec(memory_space=pltpu.SMEM),                # w1 scalar
            pl.BlockSpec(memory_space=pltpu.SMEM),                # w2 scalar
            pl.BlockSpec((block_rows, LANES), lambda i: (i, 0)),  # lane-dense tile
        ],
        out_specs=pl.BlockSpec((block_rows, LANES), lambda i: (i, 0)),
        compiler_params=pltpu.CompilerParams(
            dimension_semantics=("parallel",),
            vmem_limit_bytes=32 * 1024 * 1024,
        ),
    )(w1, w2, slab)


def het_spindly_head(x, w1, w2, *, max_block_rows=8192, min_block_rows=256,
                     single_block_rows=256):
    """x: (B, 2) f32; w1, w2: (1,) f32 (the two 1x1 Linear weights, no bias)."""
    B = x.shape[0]
    dtype = x.dtype

    # Main part: largest prefix whose flattened length is a multiple of 128 lanes
    # (64 batch rows per slab row) -> no pad, no output slice, free reshapes only.
    B_main = (B // 64) * 64
    tail = B - B_main

    out_main = None
    if B_main > 0:
        x_main = x if tail == 0 else x[:B_main]
        rows = (B_main * 2) // LANES
        slab = x_main.reshape(rows, LANES)          # free row-major view
        out_slab = _main_slab_call(
            slab, w1, w2, rows, dtype,
            max_block_rows=max_block_rows,
            min_block_rows=min_block_rows,
            single_block_rows=single_block_rows,
        )
        out_main = out_slab.reshape(B_main, 2)      # free reshape back

    if tail == 0:
        return out_main

    # <= 63-row tail: trivial JAX epilogue (cheaper than padding + slicing the
    # whole slab through HBM).
    x_tail = x[B_main:]
    out_tail = jnp.concatenate(
        [x_tail[:, 0:1] * w1[0], jnp.exp(x_tail[:, 1:2] * w2[0])], axis=1
    ).astype(dtype)

    if B_main == 0:
        return out_tail
    return jnp.concatenate([out_main, out_tail], axis=0)


def _reference(x, w1, w2):
    return jnp.concatenate(
        [x[:, 0:1] * w1[0], jnp.exp(x[:, 1:2] * w2[0])], axis=1
    )


if __name__ == "__main__":
    key = jax.random.PRNGKey(0)
    k_x, k_w, k_x2, k_x3 = jax.random.split(key, 4)

    # Deterministic parameter init:
    #   lin1.weight: deterministic random draw (stands in for PyTorch default init).
    #   lin2.weight: explicitly filled with 0.0 in __init__.
    w1 = jax.random.uniform(k_w, (1,), dtype=jnp.float32, minval=-1.0, maxval=1.0)
    w2 = jnp.zeros((1,), dtype=jnp.float32)

    # --- Small case: single lane-dense block, no grid, no pad/slice (B % 64 == 0) ---
    B = 128
    x = jax.random.normal(k_x, (B, 2), dtype=jnp.float32)
    out = jax.block_until_ready(het_spindly_head(x, w1, w2))
    ref = _reference(x, w1, w2)
    assert out.shape == (B, 2)
    assert jnp.allclose(out, ref, atol=1e-6), "mismatch vs reference (small)"

    # --- Gridded path with a ragged last block, exercised at small scale ---
    B2 = 1088  # rows = 17 -> block_rows 8 -> 3 grid steps, last one ragged
    x2 = jax.random.normal(k_x2, (B2, 2), dtype=jnp.float32)
    out2 = jax.block_until_ready(
        het_spindly_head(x2, w1, w2, min_block_rows=8, single_block_rows=8)
    )
    ref2 = _reference(x2, w1, w2)
    assert out2.shape == (B2, 2)
    assert jnp.allclose(out2, ref2, atol=1e-6), "mismatch vs reference (gridded/ragged)"

    # --- Tail case: B % 64 != 0 -> main kernel + tiny JAX epilogue, no padding ---
    B3 = 130
    x3 = jax.random.normal(k_x3, (B3, 2), dtype=jnp.float32)
    out3 = jax.block_until_ready(het_spindly_head(x3, w1, w2))
    ref3 = _reference(x3, w1, w2)
    assert out3.shape == (B3, 2)
    assert jnp.allclose(out3, ref3, atol=1e-6), "mismatch vs reference (tail)"

    print("KERNEL_OK")
</pallas_src>

<mosaic_0001>
module attributes {stable_mosaic.version = 11 : i64} {
  func.func @het_spindly_head_kernel(%arg0: memref<1xf32, #tpu.memory_space<smem>>, %arg1: memref<1xf32, #tpu.memory_space<smem>>, %arg2: memref<2x128xf32, #tpu.memory_space<vmem>>, %arg3: memref<2x128xf32, #tpu.memory_space<vmem>>) attributes {dimension_semantics = [], scalar_prefetch = 0 : i64, scratch_operands = 0 : i64, tpu.core_type = #tpu.core_type<tc>} {
    %c0 = arith.constant 0 : index
    %0 = memref.load %arg0[%c0] : memref<1xf32, #tpu.memory_space<smem>>
    %c0_0 = arith.constant 0 : index
    %1 = memref.load %arg1[%c0_0] : memref<1xf32, #tpu.memory_space<smem>>
    %c0_1 = arith.constant 0 : index
    %c0_2 = arith.constant 0 : index
    %2 = vector.load %arg2[%c0_1, %c0_2] : memref<2x128xf32, #tpu.memory_space<vmem>>, vector<2x128xf32>
    %3 = tpu.iota {dimensions = array<i32: 1>} : vector<2x128xi32>
    %c1_i32 = arith.constant 1 : i32
    %4 = vector.broadcast %c1_i32 : i32 to vector<2x128xi32>
    %5 = arith.andi %3, %4 : vector<2x128xi32>
    %c1_i32_3 = arith.constant 1 : i32
    %6 = vector.broadcast %c1_i32_3 : i32 to vector<2x128xi32>
    %7 = arith.cmpi eq, %5, %6 : vector<2x128xi32>
    %8 = vector.broadcast %1 : f32 to vector<2x128xf32>
    %9 = vector.broadcast %0 : f32 to vector<2x128xf32>
    %10 = arith.select %7, %8, %9 : vector<2x128xi1>, vector<2x128xf32>
    %11 = arith.mulf %2, %10 : vector<2x128xf32>
    %12 = math.exp %11 : vector<2x128xf32>
    %13 = arith.select %7, %12, %11 : vector<2x128xi1>, vector<2x128xf32>
    %c0_4 = arith.constant 0 : index
    %c0_5 = arith.constant 0 : index
    %14 = vector.load %arg3[%c0_4, %c0_5] : memref<2x128xf32, #tpu.memory_space<vmem>>, vector<2x128xf32>
    tpu.vector_store %arg3[%c0_4, %c0_5], %13 {strides = array<i32>} : memref<2x128xf32, #tpu.memory_space<vmem>>, vector<2x128xf32>,
    return
  }
}

</mosaic_0001>

<bundles_post_ra>
// kernel: tpu_custom_call.1
= control target key start
LH: loop header
LB: loop body
LE: loop exit
PB: predicated region body
PF: predicated region fallthrough
CT: control target
= control target key end

     0   :  { %v20_v0 = vlaneseq  ;;  %s110_s0 = inlined_call_operand.<no memory space> [shape: f32[1], index: 0, kind: input, shape index: {}]   ;;  %s111_s1 = inlined_call_operand.<no memory space> [shape: f32[1], index: 1, kind: input, shape index: {}]   ;;  %s112_s2 = inlined_call_operand.vmem [shape: f32[2,128], index: 2, kind: input, shape index: {}]   ;;  %s113_s3 = inlined_call_operand.hbm [shape: f32[2,128], index: 3, kind: output, shape index: {}]  }
   0x1   :  { %10 = vsyncpa [#allocation5], 0  ;;  %v24_v3 = vstv %s111_s1  ;;  %v25_v4 = vstv %s110_s0  ;;  %v19_v5 = vld [vmem:[%s112_s2] sm:$0x3]  ;;  %s77_s18 = smov [#allocation4]   ;;  %s39_s22 = sshll.u32 %s113_s3, 4  ;;  %s40_s22 = int_to_ptr.hbm [resolvable:$true] %s39_s22 }
   0x2   :  { %v21_v1 = vand.u32 127, %v20_v0  ;;  %s37_s19 = sshll.u32 %s77_s18, 4  ;;  %s38_s19 = int_to_ptr.vmem [resolvable:$true] %s37_s19 }
   0x4   :  { %v22_v2 = vand.u32 1, %v21_v1 }
   0x6   :  { %vm23_vm0 = vcmp.eq.s32.totalorder %v22_v2, 1 }
   0x7   :  { %v26_v6 = vsel %vm23_vm0, %v24_v3, %v25_v4 }
   0x8   :  { %v27_v7 = vmul.f32 %v26_v6, %v19_v5 }
   0xa   :  { %v28_v8 = vmul.f32 1.442695, %v27_v7 }
   0xc   :  { %49 = vpow2.f32 %v28_v8 }
  0x12   :  { %v50_v9 = vpop.eup %49 }
  0x13   :  { %v30_v10 = vsel %vm23_vm0, %v50_v9, %v27_v7 }
  0x14   :  { %31 = vst [vmem:[#allocation4] sm:$0x3] %v30_v10 }
  0x15   :  { %42 = dma.vmem_to_hbm [thread:$0]  %s38_s19, 32, %s40_s22, [#allocation5]  }
  0x16   :  { %75 = dma.done.wait [#allocation5], 32  }
  0x17   :  { %76 = vsyncadd [#allocation5], 4294967264 }
  0x18   :  { %47 = vsyncpa [#allocation5], 1 }

</bundles_post_ra>
